<compile_context>
chip_gen: v6e
topology: v6e:2x2x1
jax: 0.10.0
libtpu: 0.0.40
codegen_flags: <defaults>
</compile_context>

<pallas_src>
from functools import partial

import jax
import jax.numpy as jnp
from jax.experimental import pallas as pl
from jax.experimental.pallas import tpu as pltpu


# ----------------------------- kernels --------------------------------------


def _adain_kernel(x_ref, sb_ref, o_ref, *, eps, inv_t):
    """Single-pass AdaIN: full T per tile, fused sum / sum-sq statistics."""
    x32 = x_ref[...].astype(jnp.float32)              # (block_rows, T)
    sb = sb_ref[...]                                   # (block_rows, 2) f32

    sum_x = jnp.sum(x32, axis=-1, keepdims=True)       # one pass: both sums
    sum_sq = jnp.sum(x32 * x32, axis=-1, keepdims=True)
    mean = sum_x * inv_t
    var = jnp.maximum(sum_sq * inv_t - mean * mean, 0.0)   # biased variance

    a = sb[:, 0:1] * jax.lax.rsqrt(var + eps)           # (1 + gamma) / std
    b = sb[:, 1:2] - mean * a                           # beta - mean * a
    o_ref[...] = (x32 * a + b).astype(o_ref.dtype)


def _stats_kernel(x_ref, sum_ref, sq_ref, *, t_actual, block_t):
    """Fallback pass 1: accumulate per-row sum and sum-of-squares over T blocks."""
    j = pl.program_id(1)

    @pl.when(j == 0)
    def _init():
        sum_ref[...] = jnp.zeros_like(sum_ref)
        sq_ref[...] = jnp.zeros_like(sq_ref)

    x32 = x_ref[...].astype(jnp.float32)               # (block_rows, block_t)
    if t_actual % block_t != 0:
        # Only needed when the last T block is ragged: zero out-of-bounds lanes.
        lane = jax.lax.broadcasted_iota(jnp.int32, x32.shape, 1) + j * block_t
        x32 = jnp.where(lane < t_actual, x32, 0.0)

    sum_ref[...] += jnp.sum(x32, axis=-1, keepdims=True)
    sq_ref[...] += jnp.sum(x32 * x32, axis=-1, keepdims=True)


def _apply_kernel(x_ref, ab_ref, o_ref):
    """Fallback pass 2: per-row affine out = x * a + b (mean folded into b)."""
    ab = ab_ref[...]                                    # (block_rows, 2) f32
    a = ab[:, 0:1]
    b = ab[:, 1:2]
    o_ref[...] = (x_ref[...].astype(jnp.float32) * a + b).astype(o_ref.dtype)


# ----------------------------- wrapper ---------------------------------------


def _vmem_budgets():
    """(tile buffer budget, scoped vmem limit) derived from the device."""
    try:
        cap = pltpu.get_tpu_info().vmem_capacity_bytes
    except Exception:
        cap = 128 * 1024 * 1024
    if cap <= 64 * 1024 * 1024:                 # v7x-class: 64 MiB VMEM / TC
        return 16 * 1024 * 1024, 48 * 1024 * 1024
    return 28 * 1024 * 1024, 64 * 1024 * 1024   # v5e / v6e: 128 MiB VMEM


def adaptive_instance_norm_1d(x, style, weight, bias, *, eps=1e-5,
                              _force_two_pass=False, _force_block_t=None):
    """x: (B, C, T), style: (B, style_dim), weight: (2C, style_dim), bias: (2C,)."""
    B, C, T = x.shape
    rows = B * C

    # Style projection hoisted out of the kernel (one tiny XLA matmul).
    h = (style.astype(jnp.float32) @ weight.astype(jnp.float32).T
         + bias.astype(jnp.float32))                           # (B, 2C) f32
    gamma, beta = h[:, :C], h[:, C:]
    scale = (1.0 + gamma).reshape(rows)                        # (rows,) f32
    beta = beta.reshape(rows)                                  # (rows,) f32

    x2 = x.reshape(rows, T)                                    # no pad, no copy
    itemsize = jnp.dtype(x.dtype).itemsize
    buf_budget, vmem_limit = _vmem_budgets()

    # Per-row VMEM cost of a full-T tile: double-buffered in + out tiles plus
    # ~2 f32 temporaries, accounted at the lane-padded (128) width.
    t_lanes = ((T + 127) // 128) * 128
    bytes_per_row = t_lanes * (4 * itemsize + 8)

    if not _force_two_pass and 8 * bytes_per_row <= buf_budget:
        # ---------------- single-pass path: grid over rows only ---------------
        block_rows = max(8, (buf_budget // bytes_per_row) // 8 * 8)
        # Keep >= ~8 grid steps when rows allow (megacore sharding / pipelining).
        cap = max(8, ((rows + 7) // 8 + 7) // 8 * 8)
        block_rows = min(block_rows, cap)
        if rows <= block_rows:
            block_rows = rows            # single full-extent row block is legal

        sb = jnp.stack([scale, beta], axis=-1)                 # (rows, 2) f32
        out = pl.pallas_call(
            partial(_adain_kernel, eps=float(eps), inv_t=1.0 / T),
            out_shape=jax.ShapeDtypeStruct((rows, T), x.dtype),
            grid=(pl.cdiv(rows, block_rows),),
            in_specs=[
                pl.BlockSpec((block_rows, T), lambda i: (i, 0)),
                pl.BlockSpec((block_rows, 2), lambda i: (i, 0)),
            ],
            out_specs=pl.BlockSpec((block_rows, T), lambda i: (i, 0)),
            compiler_params=pltpu.CompilerParams(
                dimension_semantics=("parallel",),
                vmem_limit_bytes=vmem_limit),
        )(x2, sb)
        return out.reshape(B, C, T)

    # ---------------- two-pass fallback for very long T -----------------------
    block_rows = rows if rows < 8 else 8
    bpe = 4 * itemsize + 8
    block_t = max(128, (buf_budget // (max(block_rows, 8) * bpe)) // 128 * 128)
    if _force_block_t is not None:
        block_t = int(_force_block_t)
    block_t = min(block_t, ((T + 127) // 128) * 128)
    n_r = pl.cdiv(rows, block_rows)
    n_t = pl.cdiv(T, block_t)

    # Pass 1: streaming statistics (T axis is the reduction axis).
    sum_x, sum_sq = pl.pallas_call(
        partial(_stats_kernel, t_actual=T, block_t=block_t),
        out_shape=(jax.ShapeDtypeStruct((rows, 1), jnp.float32),
                   jax.ShapeDtypeStruct((rows, 1), jnp.float32)),
        grid=(n_r, n_t),
        in_specs=[pl.BlockSpec((block_rows, block_t), lambda i, j: (i, j))],
        out_specs=(pl.BlockSpec((block_rows, 1), lambda i, j: (i, 0)),
                   pl.BlockSpec((block_rows, 1), lambda i, j: (i, 0))),
        compiler_params=pltpu.CompilerParams(
            dimension_semantics=("parallel", "arbitrary"),
            vmem_limit_bytes=vmem_limit),
    )(x2)

    inv_t = 1.0 / T
    mean = sum_x[:, 0] * inv_t
    var = jnp.maximum(sum_sq[:, 0] * inv_t - mean * mean, 0.0)
    a = scale * jax.lax.rsqrt(var + eps)                       # (1+gamma)/std
    b = beta - mean * a
    ab = jnp.stack([a, b], axis=-1)                            # (rows, 2) f32

    # Pass 2: per-row affine apply, fully parallel over rows and T.
    out = pl.pallas_call(
        _apply_kernel,
        out_shape=jax.ShapeDtypeStruct((rows, T), x.dtype),
        grid=(n_r, n_t),
        in_specs=[pl.BlockSpec((block_rows, block_t), lambda i, j: (i, j)),
                  pl.BlockSpec((block_rows, 2), lambda i, j: (i, 0))],
        out_specs=pl.BlockSpec((block_rows, block_t), lambda i, j: (i, j)),
        compiler_params=pltpu.CompilerParams(
            dimension_semantics=("parallel", "parallel"),
            vmem_limit_bytes=vmem_limit),
    )(x2, ab)
    return out.reshape(B, C, T)


# ----------------------------- reference & test -------------------------------


def _reference(x, style, weight, bias, eps=1e-5):
    h = style @ weight.T + bias                    # (B, 2C)
    C = x.shape[1]
    gamma = h[:, :C][:, :, None]
    beta = h[:, C:][:, :, None]
    mean = x.mean(axis=-1, keepdims=True)
    var = ((x - mean) ** 2).mean(axis=-1, keepdims=True)
    x_norm = (x - mean) / jnp.sqrt(var + eps)
    return (1.0 + gamma) * x_norm + beta


if __name__ == "__main__":
    B, C, T, S = 2, 4, 16, 8  # batch, num_features, seq_len, style_dim

    key = jax.random.PRNGKey(0)
    kx, ks, kw, kb = jax.random.split(key, 4)

    x = jax.random.normal(kx, (B, C, T), dtype=jnp.float32)
    style = jax.random.normal(ks, (B, S), dtype=jnp.float32)
    # Deterministic synthetic parameters for nn.Linear(style_dim, 2*num_features)
    weight = jax.random.normal(kw, (2 * C, S), dtype=jnp.float32) * 0.1
    bias = jax.random.normal(kb, (2 * C,), dtype=jnp.float32) * 0.1

    # Main single-pass path.
    out = adaptive_instance_norm_1d(x, style, weight, bias)
    out = jax.block_until_ready(out)
    ref = _reference(x, style, weight, bias)
    assert out.shape == (B, C, T)
    assert jnp.allclose(out, ref, atol=1e-4, rtol=1e-4), "single-pass mismatch"

    # Exercise the long-T two-pass fallback path (forced at a small shape with
    # a ragged last T block) to keep it compile- and correctness-checked.
    T2 = 300
    x_long = jax.random.normal(kx, (B, C, T2), dtype=jnp.float32)
    out2 = adaptive_instance_norm_1d(x_long, style, weight, bias,
                                     _force_two_pass=True, _force_block_t=128)
    out2 = jax.block_until_ready(out2)
    ref2 = _reference(x_long, style, weight, bias)
    assert out2.shape == (B, C, T2)
    assert jnp.allclose(out2, ref2, atol=1e-4, rtol=1e-4), "two-pass mismatch"

    print("KERNEL_OK")
</pallas_src>

<mosaic_0001>
module attributes {stable_mosaic.version = 11 : i64} {
  func.func @_adain_kernel(%arg0: i32, %arg1: memref<8x16xf32, #tpu.memory_space<vmem>>, %arg2: memref<8x2xf32, #tpu.memory_space<vmem>>, %arg3: memref<8x16xf32, #tpu.memory_space<vmem>>) attributes {dimension_semantics = [#tpu.dimension_semantics<parallel>], iteration_bounds = array<i64: 1>, scalar_prefetch = 0 : i64, scratch_operands = 0 : i64, tpu.core_type = #tpu.core_type<tc>, window_params = [{transform_indices = @transform_0, window_bounds = array<i64: 8, 16>}, {transform_indices = @transform_1, window_bounds = array<i64: 8, 2>}, {transform_indices = @transform_2, window_bounds = array<i64: 8, 16>}]} {
    %c0 = arith.constant 0 : index
    %c0_0 = arith.constant 0 : index
    %0 = vector.load %arg1[%c0, %c0_0] : memref<8x16xf32, #tpu.memory_space<vmem>>, vector<8x16xf32>
    %c0_1 = arith.constant 0 : index
    %c0_2 = arith.constant 0 : index
    %1 = vector.load %arg2[%c0_1, %c0_2] : memref<8x2xf32, #tpu.memory_space<vmem>>, vector<8x2xf32>
    %cst = arith.constant dense<0.000000e+00> : vector<8xf32>
    %2 = vector.multi_reduction <add>, %0, %cst [1] : vector<8x16xf32> to vector<8xf32>
    %3 = vector.shape_cast %2 : vector<8xf32> to vector<8x1xf32>
    %4 = arith.mulf %0, %0 : vector<8x16xf32>
    %cst_3 = arith.constant dense<0.000000e+00> : vector<8xf32>
    %5 = vector.multi_reduction <add>, %4, %cst_3 [1] : vector<8x16xf32> to vector<8xf32>
    %6 = vector.shape_cast %5 : vector<8xf32> to vector<8x1xf32>
    %cst_4 = arith.constant 6.250000e-02 : f32
    %7 = vector.broadcast %cst_4 : f32 to vector<8x1xf32>
    %8 = arith.mulf %3, %7 : vector<8x1xf32>
    %cst_5 = arith.constant 6.250000e-02 : f32
    %9 = vector.broadcast %cst_5 : f32 to vector<8x1xf32>
    %10 = arith.mulf %6, %9 : vector<8x1xf32>
    %11 = arith.mulf %8, %8 : vector<8x1xf32>
    %12 = arith.subf %10, %11 : vector<8x1xf32>
    %cst_6 = arith.constant 0.000000e+00 : f32
    %13 = vector.broadcast %cst_6 : f32 to vector<8x1xf32>
    %14 = arith.maximumf %12, %13 : vector<8x1xf32>
    %15 = vector.extract_strided_slice %1 {offsets = [0, 0], sizes = [8, 1], strides = [1, 1]} : vector<8x2xf32> to vector<8x1xf32>
    %cst_7 = arith.constant 9.99999974E-6 : f32
    %16 = vector.broadcast %cst_7 : f32 to vector<8x1xf32>
    %17 = arith.addf %14, %16 : vector<8x1xf32>
    %18 = math.rsqrt %17 : vector<8x1xf32>
    %19 = arith.mulf %15, %18 : vector<8x1xf32>
    %20 = vector.extract_strided_slice %1 {offsets = [0, 1], sizes = [8, 1], strides = [1, 1]} : vector<8x2xf32> to vector<8x1xf32>
    %21 = arith.mulf %8, %19 : vector<8x1xf32>
    %22 = arith.subf %20, %21 : vector<8x1xf32>
    %23 = vector.broadcast %19 : vector<8x1xf32> to vector<8x16xf32>
    %24 = arith.mulf %0, %23 : vector<8x16xf32>
    %25 = vector.broadcast %22 : vector<8x1xf32> to vector<8x16xf32>
    %26 = arith.addf %24, %25 : vector<8x16xf32>
    %c0_8 = arith.constant 0 : index
    %c0_9 = arith.constant 0 : index
    %27 = vector.load %arg3[%c0_8, %c0_9] : memref<8x16xf32, #tpu.memory_space<vmem>>, vector<8x16xf32>
    tpu.vector_store %arg3[%c0_8, %c0_9], %26 {strides = array<i32>} : memref<8x16xf32, #tpu.memory_space<vmem>>, vector<8x16xf32>,
    return
  }
  func.func @transform_0(%arg0: i32) -> (i32, i32) {
    %c0_i32 = arith.constant 0 : i32
    %c0_i32_0 = arith.constant 0 : i32
    return %arg0, %c0_i32 : i32, i32
  }
  func.func @transform_1(%arg0: i32) -> (i32, i32) {
    %c0_i32 = arith.constant 0 : i32
    %c0_i32_0 = arith.constant 0 : i32
    return %arg0, %c0_i32 : i32, i32
  }
  func.func @transform_2(%arg0: i32) -> (i32, i32) {
    %c0_i32 = arith.constant 0 : i32
    %c0_i32_0 = arith.constant 0 : i32
    return %arg0, %c0_i32 : i32, i32
  }
}

</mosaic_0001>

<bundles_post_ra>
// kernel: tpu_custom_call.1
= control target key start
LH: loop header
LB: loop body
LE: loop exit
PB: predicated region body
PF: predicated region fallthrough
CT: control target
= control target key end

     0   :  { %vm14_vm0 = vcmask 130048   ;;  %s124_s0 = inlined_call_operand.vmem [shape: f32[8,16], index: 0, kind: input, shape index: {}]   ;;  %s125_s1 = inlined_call_operand.vmem [shape: f32[8,2], index: 1, kind: input, shape index: {}]   ;;  %s126_s2 = inlined_call_operand.hbm [shape: f32[8,16], index: 2, kind: output, shape index: {}]  }
   0x1   :  { %v12_v0 = vld [vmem:[%s124_s0] sm:$0xff] }
   0x2   :  { %7 = vsyncpa [#allocation3], 0  ;;  %v15_v1 = vsel %vm14_vm0, %v12_v0, 0.0  ;;  %v18_v2 = vmul.f32 %v12_v0, %v12_v0  ;;  %v93_v4 = vmov 0   ;;  %v94_v13 = vmov 1   ;;  %v13_v14 = vld [vmem:[%s125_s1] sm:$0xff] }
   0x3   :  { %16 = vadd.xlane.f32.xlu0 %v15_v1  ;;  %67 = vset.pattern.permute.xlu1 %v93_v4  ;;  %s95_s12 = smov 1   ;;  %s96_s13 = smov [#allocation2]  }
   0x4   :  { %v19_v3 = vsel %vm14_vm0, %v18_v2, 0.0  ;;  %68 = vset.pattern.permute.xlu0 %v94_v13  ;;  %s55_s14 = sshll.u32 %s96_s13, 4  ;;  %s56_s14 = int_to_ptr.vmem [resolvable:$true] %s55_s14 }
   0x5   :  { %s71_s15 = scalar_lea.vmem %s56_s14, 128  ;;  %p76_p1 = scmp.lt.s32.totalorder %s56_s14, %s56_s14 }
   0x6   :  { %p72_p0 = scmp.ne.s32.totalorder %s56_s14, %s71_s15  ;;  %p77_p2 = scmp.lt.s32.totalorder %s71_s15, %s71_s15 }
   0x7   :  { %20 = vadd.xlane.f32.xlu0 %v19_v3 }
   0x8   :  { %p78_p3 = por %p77_p2, %p76_p1 }
   0xa   :  { %p79_p4 = pnand %p78_p3, %p72_p0 }
  0x8c   :  { %v17_v5 = vpop.xlane.xlu0 %16 }
  0x8d   :  { %v22_v6 = vmul.f32 0.0625, %v17_v5 }
  0x8f   :  { %v24_v8 = vmul.f32 %v22_v6, %v22_v6 }
  0x90   :  { %v21_v7 = vpop.xlane.xlu0 %20 }
  0x91   :  { %v23_v9 = vmul.f32 0.0625, %v21_v7 }
  0x93   :  { %v25_v10 = vsub.f32 %v23_v9, %v24_v8 }
  0x95   :  { %v26_v11 = vmax.f32 %v25_v10, 0.0 }
  0x97   :  { %v27_v12 = vadd.f32 1e-05, %v26_v11 }
  0x99   :  { %69 = vrsqrt.f32 %v27_v12 }
  0xa6   :  { %v70_v15 = vpop.eup %69 }
  0xa7   :  { %v29_v16 = vmul.f32 %v70_v15, %v13_v14 }
  0xa9   :  { %v30_v17 = vmul.f32 %v29_v16, %v22_v6 }
  0xab   :  { %32 = vrot.lane.b32.xlu1 %v30_v17, %s95_s12 }
  0xaf   :  { %38 = vperm.xlu1 %67, %v29_v16  }
 0x11d   :  { %v33_v18 = vpop.permute.xlu1 %32 }
 0x11e   :  { %v35_v19 = vsub.f32 %v13_v14, %v33_v18 }
 0x120   :  { %44 = vperm.xlu0 %68, %v35_v19  }
 0x12a   :  { %v39_v20 = vpop.permute.xlu1 %38 }
 0x12b   :  { %v41_v21 = vmul.f32 %v39_v20, %v12_v0 }
 0x19b   :  { %v45_v22 = vpop.permute.xlu0 %44 }
 0x19c   :  { %v47_v23 = vadd.f32 %v45_v22, %v41_v21 }
 0x19e   :  { %48 = vst.msk [vmem:[#allocation2] sm:$0xff] %vm14_vm0, %v47_v23 }
 0x19f   :  { %82 = shalt.err (!%p79_p4)
}
 0x1a0   :  { %58 = dma.vmem_to_hbm [thread:$0]  %s56_s14, 128, %s126_s2, [#allocation3]  }
 0x1a1   :  { %91 = dma.done.wait [#allocation3], 128  }
 0x1a2   :  { %92 = vsyncadd [#allocation3], 4294967168 }
 0x1a3   :  { %62 = vsyncpa [#allocation3], 1 }

</bundles_post_ra>
